<compile_context>
chip_gen: v5e
topology: v5e:2x2
jax: 0.10.0
libtpu: 0.0.40
codegen_flags: <defaults>
</compile_context>

<pallas_src>
import functools

import jax
import jax.numpy as jnp
from jax.experimental import pallas as pl
from jax.experimental.pallas import tpu as pltpu


def _round_up(n, m):
    return ((n + m - 1) // m) * m


def _query_tpu():
    """Best-effort hardware query. Conservative defaults (1 TC, 64 MiB VMEM =
    v7x physical) if the query is unavailable."""
    num_cores = 1
    vmem_bytes = 64 * 1024 * 1024
    try:
        info = pltpu.get_tpu_info()
        for name in ("num_cores", "num_tensorcores", "tensorcore_count",
                     "cores_per_chip"):
            v = getattr(info, name, None)
            if isinstance(v, int) and not isinstance(v, bool) and v > 0:
                num_cores = v
                break
        v = getattr(info, "vmem_capacity_bytes", None)
        if isinstance(v, int) and not isinstance(v, bool) and v > 0:
            vmem_bytes = v
    except Exception:
        pass
    return num_cores, vmem_bytes


_NUM_CORES, _VMEM_CAP = _query_tpu()


def _highway_kernel(x_ref, w_ref, b_ref, o_ref):
    d = x_ref.shape[-1]
    dp = w_ref.shape[-1] // 2           # lane-aligned half width (multiple of 128)

    x = x_ref[...]
    x_f32 = x.astype(jnp.float32)

    # One fused matmul on the MXU: (TM, D) @ (D, 2*Dp) -> (TM, 2*Dp), f32 acc.
    lin = jnp.dot(x.astype(jnp.bfloat16), w_ref[...],
                  preferred_element_type=jnp.float32)
    lin = lin + b_ref[...]              # (1, 2*Dp) f32 bias broadcast

    # Lane-aligned split: [0:dp] -> H path (relu, VPU); [dp:2dp] -> T path.
    h = jnp.maximum(lin[:, :dp], 0.0)
    z = lin[:, dp:]
    # sigmoid(z) = 1/(1+exp(-z)): exp on the EUP, approx reciprocal on the EUP
    # (keeps the divide off the 4 VALU slots; all math stays f32 for v5e).
    t = pl.reciprocal(1.0 + jnp.exp(-z), approx=True)

    if dp != d:                          # D not a multiple of 128: drop padding
        h = h[:, :d]
        t = t[:, :d]

    # Highway gate: H*T + x*(1-T) == T*(H - x) + x  (one fewer multiply), f32.
    o_ref[...] = (t * (h - x_f32) + x_f32).astype(o_ref.dtype)


def fuse_highway_params(w_h, b_h, w_t, b_t):
    """Fuse the two PyTorch-layout (D_out, D_in) linears into one (D, 2*Dp)
    bf16 weight and (1, 2*Dp) f32 bias, Dp = round_up(D, 128) so the relu /
    sigmoid halves split at a lane-aligned boundary.  Call ONCE at parameter
    initialization time, not inside the jitted forward."""
    D = w_h.shape[0]
    Dp = _round_up(D, 128)
    w = jnp.zeros((D, 2 * Dp), jnp.float32)
    w = w.at[:, :D].set(w_h.T.astype(jnp.float32))
    w = w.at[:, Dp:Dp + D].set(w_t.T.astype(jnp.float32))
    b = jnp.zeros((1, 2 * Dp), jnp.float32)
    b = b.at[0, :D].set(b_h.astype(jnp.float32))
    b = b.at[0, Dp:Dp + D].set(b_t.astype(jnp.float32))
    return w.astype(jnp.bfloat16), b


def _choose_tile_m(M, requested, sublane, per_row_bytes, fixed_bytes,
                   num_cores, vmem_cap):
    """Largest row tile that fits a conservative VMEM budget, rounded to the
    sublane granularity; on multi-TC chips keep the grid a multiple of the
    core count (only when M is large enough for the split to pay)."""
    budget = min(vmem_cap // 2, 32 * 1024 * 1024) - fixed_bytes
    cap_rows = max(sublane, (max(budget, 0) // per_row_bytes) // sublane * sublane)

    req = max(sublane, (requested // sublane) * sublane)   # clamp user tile_m
    tm = min(req, cap_rows, _round_up(M, sublane))

    if num_cores > 1:
        gm = pl.cdiv(M, tm)
        if gm >= 2 and gm % num_cores != 0:
            gm = _round_up(gm, num_cores)
            tm = min(tm, max(sublane, _round_up(pl.cdiv(M, gm), sublane)))
        elif gm < num_cores and M > sublane * num_cores:
            tm = max(sublane, _round_up(pl.cdiv(M, num_cores), sublane))
    return tm


@functools.partial(jax.jit, static_argnames=("tile_m",))
def highway_forward(x, w_fused, b_fused, *, tile_m=4096):
    """x: (..., D) feature-last; w_fused/b_fused from fuse_highway_params.
    Output has the dtype of x (bf16 in -> bf16 out; gate math is f32)."""
    orig_shape = x.shape
    D = orig_shape[-1]
    Dp2 = w_fused.shape[1]                 # 2 * round_up(D, 128)
    x2 = x.reshape(-1, D)                  # no pad: Pallas masks the partial tail
    M = x2.shape[0]

    x_bytes = x2.dtype.itemsize
    sublane = 16 if x_bytes < 4 else 8     # bf16 packs 16 sublanes per vreg

    w_bytes = w_fused.size * w_fused.dtype.itemsize
    fixed_bytes = 2 * w_bytes + 2 * b_fused.size * 4
    # x + out (double-buffered) + f32 (TM, 2*Dp) matmul result temp.
    per_row_bytes = 2 * D * x_bytes + 2 * D * x_bytes + Dp2 * 4

    tm = _choose_tile_m(M, tile_m, sublane, per_row_bytes, fixed_bytes,
                        _NUM_CORES, _VMEM_CAP)
    grid_m = pl.cdiv(M, tm)

    # VMEM limit from the actual footprint (+ headroom), under v7x's 64 MiB.
    footprint = fixed_bytes + tm * per_row_bytes
    vmem_limit = int(min(max(footprint * 5 // 4 + 4 * 1024 * 1024,
                             20 * 1024 * 1024),
                         56 * 1024 * 1024))

    # Single-buffer the grid-invariant weight only when it is large enough for
    # the duplicate copy to matter (irrelevant at D=128: 64 KiB).
    w_spec_kwargs = {}
    if w_bytes > (4 << 20):
        w_spec_kwargs["pipeline_mode"] = pl.Buffered(1)

    cost = pl.CostEstimate(
        flops=2 * M * D * Dp2,
        transcendentals=M * (Dp2 // 2),            # exp for the sigmoid half
        bytes_accessed=(M * D * x_bytes            # x in
                        + w_bytes                  # bf16 weights
                        + b_fused.size * 4         # f32 bias
                        + M * D * x_bytes),        # out
    )

    out = pl.pallas_call(
        _highway_kernel,
        out_shape=jax.ShapeDtypeStruct((M, D), x.dtype),
        grid_spec=pltpu.PrefetchScalarGridSpec(
            num_scalar_prefetch=0,
            grid=(grid_m,),
            in_specs=[
                pl.BlockSpec((tm, D), lambda i: (i, 0)),                    # x tile
                pl.BlockSpec((D, Dp2), lambda i: (0, 0), **w_spec_kwargs),  # W (resident)
                pl.BlockSpec((1, Dp2), lambda i: (0, 0)),                   # bias
            ],
            out_specs=pl.BlockSpec((tm, D), lambda i: (i, 0)),
        ),
        compiler_params=pltpu.CompilerParams(
            dimension_semantics=("parallel",),
            vmem_limit_bytes=vmem_limit,
        ),
        cost_estimate=cost,
    )(x2, w_fused, b_fused)

    return out.reshape(orig_shape)


def _reference(x, w_h, b_h, w_t, b_t):
    xf = x.astype(jnp.float32)
    H = jax.nn.relu(xf @ w_h.T + b_h)
    T = jax.nn.sigmoid(xf @ w_t.T + b_t)
    return (H * T + xf * (1.0 - T)).astype(x.dtype)


if __name__ == "__main__":
    def run_case(key, batch, seq, D, dtype, atol, rtol):
        kx, kwh, kbh, kwt, kbt = jax.random.split(key, 5)
        bound = 1.0 / jnp.sqrt(jnp.float32(D))
        x = jax.random.normal(kx, (batch, seq, D), jnp.float32).astype(dtype)
        # nn.Linear-style uniform(-1/sqrt(D), 1/sqrt(D)) init.
        w_h = jax.random.uniform(kwh, (D, D), jnp.float32, -bound, bound)
        b_h = jax.random.uniform(kbh, (D,), jnp.float32, -bound, bound)
        w_t = jax.random.uniform(kwt, (D, D), jnp.float32, -bound, bound)
        b_t = jax.random.uniform(kbt, (D,), jnp.float32, -bound, bound)

        w_f, b_f = fuse_highway_params(w_h, b_h, w_t, b_t)   # once, outside jit
        out = highway_forward(x, w_f, b_f)
        jax.block_until_ready(out)

        ref = _reference(x, w_h, b_h, w_t, b_t)
        assert out.shape == x.shape and out.dtype == x.dtype
        # Tolerance covers bf16 matmul operands / bf16 I-O / approx reciprocal
        # (intentional precision tradeoffs, f32 accumulation + gate inside).
        assert jnp.allclose(out.astype(jnp.float32), ref.astype(jnp.float32),
                            atol=atol, rtol=rtol), f"mismatch D={D} dtype={dtype}"

    key = jax.random.PRNGKey(0)
    k1, k2, k3 = jax.random.split(key, 3)
    # f32 I/O, D=128, M=18 -> exercises the unpadded partial row tile.
    run_case(k1, 2, 9, 128, jnp.float32, 3e-2, 3e-2)
    # bf16 I/O (halved activation HBM bytes), D=128.
    run_case(k2, 2, 9, 128, jnp.bfloat16, 6e-2, 6e-2)
    # D not a multiple of 128 -> lane-padded weight halves, aligned split.
    run_case(k3, 2, 5, 96, jnp.float32, 3e-2, 3e-2)

    print("KERNEL_OK")
</pallas_src>

<mosaic_0001>
module attributes {stable_mosaic.version = 11 : i64} {
  func.func @_highway_kernel(%arg0: i32, %arg1: memref<24x128xf32, #tpu.memory_space<vmem>>, %arg2: memref<128x256xbf16, #tpu.memory_space<vmem>>, %arg3: memref<1x256xf32, #tpu.memory_space<vmem>>, %arg4: memref<24x128xf32, #tpu.memory_space<vmem>>) attributes {dimension_semantics = [#tpu.dimension_semantics<parallel>], iteration_bounds = array<i64: 1>, scalar_prefetch = 0 : i64, scratch_operands = 0 : i64, tpu.core_type = #tpu.core_type<tc>, window_params = [{transform_indices = @transform_0, window_bounds = array<i64: 24, 128>}, {pipeline_mode = #tpu.pipeline_mode<synchronous>, transform_indices = @transform_1, window_bounds = array<i64: 128, 256>}, {pipeline_mode = #tpu.pipeline_mode<synchronous>, transform_indices = @transform_2, window_bounds = array<i64: 1, 256>}, {transform_indices = @transform_3, window_bounds = array<i64: 24, 128>}]} {
    %c0 = arith.constant 0 : index
    %c0_0 = arith.constant 0 : index
    %0 = vector.load %arg1[%c0, %c0_0] : memref<24x128xf32, #tpu.memory_space<vmem>>, vector<24x128xf32>
    %1 = arith.truncf %0 : vector<24x128xf32> to vector<24x128xbf16>
    %c0_1 = arith.constant 0 : index
    %c0_2 = arith.constant 0 : index
    %2 = vector.load %arg2[%c0_1, %c0_2] : memref<128x256xbf16, #tpu.memory_space<vmem>>, vector<128x256xbf16>
    %cst = arith.constant dense<0.000000e+00> : vector<24x256xf32>
    %3 = tpu.matmul %1, %2, %cst {dimension_numbers = #tpu.dot_dimension_numbers<[1], [0], [0], [1], [0, 0, 1, 1], [], []>} : vector<24x128xbf16>, vector<128x256xbf16>, vector<24x256xf32> -> vector<24x256xf32>
    %c0_3 = arith.constant 0 : index
    %c0_4 = arith.constant 0 : index
    %4 = vector.load %arg3[%c0_3, %c0_4] : memref<1x256xf32, #tpu.memory_space<vmem>>, vector<1x256xf32>
    %5 = vector.broadcast %4 : vector<1x256xf32> to vector<24x256xf32>
    %6 = arith.addf %3, %5 : vector<24x256xf32>
    %7 = vector.extract_strided_slice %6 {offsets = [0, 0], sizes = [24, 128], strides = [1, 1]} : vector<24x256xf32> to vector<24x128xf32>
    %cst_5 = arith.constant 0.000000e+00 : f32
    %8 = vector.broadcast %cst_5 : f32 to vector<24x128xf32>
    %9 = arith.maximumf %7, %8 : vector<24x128xf32>
    %10 = vector.extract_strided_slice %6 {offsets = [0, 128], sizes = [24, 128], strides = [1, 1]} : vector<24x256xf32> to vector<24x128xf32>
    %cst_6 = arith.constant 0.000000e+00 : f32
    %11 = vector.broadcast %cst_6 : f32 to vector<24x128xf32>
    %12 = arith.subf %11, %10 : vector<24x128xf32>
    %13 = math.exp %12 : vector<24x128xf32>
    %cst_7 = arith.constant 1.000000e+00 : f32
    %14 = vector.broadcast %cst_7 : f32 to vector<24x128xf32>
    %15 = arith.addf %14, %13 : vector<24x128xf32>
    %16 = tpu.reciprocal %15 {approx = true} : vector<24x128xf32> -> vector<24x128xf32>
    %17 = arith.subf %9, %0 : vector<24x128xf32>
    %18 = arith.mulf %16, %17 : vector<24x128xf32>
    %19 = arith.addf %18, %0 : vector<24x128xf32>
    %c0_8 = arith.constant 0 : index
    %c0_9 = arith.constant 0 : index
    %20 = vector.load %arg4[%c0_8, %c0_9] : memref<24x128xf32, #tpu.memory_space<vmem>>, vector<24x128xf32>
    tpu.vector_store %arg4[%c0_8, %c0_9], %19 {strides = array<i32>} : memref<24x128xf32, #tpu.memory_space<vmem>>, vector<24x128xf32>,
    return
  }
  func.func @transform_0(%arg0: i32) -> (i32, i32) {
    %c0_i32 = arith.constant 0 : i32
    %c0_i32_0 = arith.constant 0 : i32
    return %arg0, %c0_i32 : i32, i32
  }
  func.func @transform_1(%arg0: i32) -> (i32, i32) {
    %c0_i32 = arith.constant 0 : i32
    %c0_i32_0 = arith.constant 0 : i32
    %c0_i32_1 = arith.constant 0 : i32
    return %c0_i32, %c0_i32_0 : i32, i32
  }
  func.func @transform_2(%arg0: i32) -> (i32, i32) {
    %c0_i32 = arith.constant 0 : i32
    %c0_i32_0 = arith.constant 0 : i32
    %c0_i32_1 = arith.constant 0 : i32
    return %c0_i32, %c0_i32_0 : i32, i32
  }
  func.func @transform_3(%arg0: i32) -> (i32, i32) {
    %c0_i32 = arith.constant 0 : i32
    %c0_i32_0 = arith.constant 0 : i32
    return %arg0, %c0_i32 : i32, i32
  }
}

</mosaic_0001>

<bundles_post_ra>
// kernel: highway_forward.1
= control target key start
LH: loop header
LB: loop body
LE: loop exit
PB: predicated region body
PF: predicated region fallthrough
CT: control target
= control target key end

     0   :  { %8 = vsyncpa [#allocation3], 0  ;;  %s345_s15 = smov [#allocation2]   ;;  %s346_s17 = smov 128   ;;  %s403_s0 = inlined_call_operand.vmem [shape: f32[18,128], index: 0, kind: input, shape index: {}]   ;;  %s404_s1 = inlined_call_operand.hbm [shape: bf16[128,256], index: 1, kind: input, shape index: {}]   ;;  %s405_s2 = inlined_call_operand.vmem [shape: f32[1,256], index: 2, kind: input, shape index: {}]   ;;  %s406_s3 = inlined_call_operand.vmem [shape: f32[18,128], index: 3, kind: output, shape index: {}]  }
   0x1   :  { %s15_s14 = sshll.u32 %s404_s1, 4  ;;  %s17_s16 = sshll.u32 %s345_s15, 4  ;;  %s16_s14 = int_to_ptr.hbm [resolvable:$true] %s15_s14  ;;  %s18_s16 = int_to_ptr.vmem [resolvable:$true] %s17_s16 }
   0x2   :  { %s347_s18 = smov 8  }
   0x3   :  { %23 = dma.hbm_to_vmem [thread:$0]  %s16_s14, 2048, %s18_s16, [#allocation3], %s346_s17, %s346_s17, %s347_s18  }
   0x4   :  { %343 = dma.done.wait [#allocation3], 2048  }
   0x5   :  { %344 = vsyncadd [#allocation3], 4294965248  ;;  %v286_v0 = vld [vmem:[#allocation2 + $0x74] sm:$0xf]  ;;  %v268_v1 = vld [vmem:[#allocation2 + $0x78] sm:$0xf0] }
   0x6   :  { %v284_v2 = vld [vmem:[#allocation2 + $0x64] sm:$0xf]  ;;  %v271_v3 = vor.u32 %v286_v0, %v268_v1  ;;  %v260_v4 = vld [vmem:[#allocation2 + $0x68] sm:$0xf0]  ;;  %v266_v5 = vld [vmem:[#allocation2 + $0x70] sm:$0xf] }
   0x7   :  { %v287_v6 = vld [vmem:[#allocation2 + $0x74] sm:$0xf0]  ;;  %v258_v8 = vld [vmem:[#allocation2 + $0x60] sm:$0xf]  ;;  %v263_v9 = vor.u32 %v284_v2, %v260_v4  ;;  %v285_v10 = vld [vmem:[#allocation2 + $0x64] sm:$0xf0] }
   0x8   :  { %v267_v7 = vor.u32 %v287_v6, %v266_v5  ;;  %155 = vmatpush.bf16.msra.mxu1 %v271_v3  ;;  %296 = vmatpush.bf16.msra.mxu3 %v271_v3  ;;  %v282_v11 = vld [vmem:[#allocation2 + $0x54] sm:$0xf]  ;;  %v252_v12 = vld [vmem:[#allocation2 + $0x58] sm:$0xf0]  ;;  %v259_v13 = vor.u32 %v285_v10, %v258_v8  ;;  %v250_v14 = vld [vmem:[#allocation2 + $0x50] sm:$0xf] }
   0x9   :  { %v283_v15 = vld [vmem:[#allocation2 + $0x54] sm:$0xf0]  ;;  %v255_v16 = vor.u32 %v282_v11, %v252_v12  ;;  %v280_v17 = vld [vmem:[#allocation2 + $0x44] sm:$0xf]  ;;  %v244_v18 = vld [vmem:[#allocation2 + $0x48] sm:$0xf0] }
   0xa   :  { %137 = vmatpush.bf16.msra.mxu0 %v267_v7  ;;  %288 = vmatpush.bf16.msra.mxu2 %v267_v7  ;;  %v251_v19 = vor.u32 %v283_v15, %v250_v14  ;;  %v242_v20 = vld [vmem:[#allocation2 + $0x40] sm:$0xf]  ;;  %v281_v21 = vld [vmem:[#allocation2 + $0x44] sm:$0xf0]  ;;  %v247_v22 = vor.u32 %v280_v17, %v244_v18  ;;  %v278_v23 = vld [vmem:[#allocation2 + $0x34] sm:$0xf] }
   0xb   :  { %v236_v24 = vld [vmem:[#allocation2 + $0x38] sm:$0xf0]  ;;  %v243_v25 = vor.u32 %v281_v21, %v242_v20  ;;  %v234_v26 = vld [vmem:[#allocation2 + $0x30] sm:$0xf]  ;;  %v279_v27 = vld [vmem:[#allocation2 + $0x34] sm:$0xf0] }
   0xc   :  { %156 = vmatpush.bf16.msra.mxu1 %v263_v9  ;;  %297 = vmatpush.bf16.msra.mxu3 %v263_v9  ;;  %v239_v28 = vor.u32 %v278_v23, %v236_v24  ;;  %v276_v29 = vld [vmem:[#allocation2 + $0x24] sm:$0xf]  ;;  %v228_v30 = vld [vmem:[#allocation2 + $0x28] sm:$0xf0]  ;;  %v235_v31 = vor.u32 %v279_v27, %v234_v26  ;;  %v226_v32 = vld [vmem:[#allocation2 + $0x20] sm:$0xf] }
   0xd   :  { %v277_v33 = vld [vmem:[#allocation2 + $0x24] sm:$0xf0]  ;;  %v231_v34 = vor.u32 %v276_v29, %v228_v30  ;;  %v274_v35 = vld [vmem:[#allocation2 + $0x14] sm:$0xf]  ;;  %v220_v36 = vld [vmem:[#allocation2 + $0x18] sm:$0xf0] }
   0xe   :  { %138 = vmatpush.bf16.msra.mxu0 %v259_v13  ;;  %289 = vmatpush.bf16.msra.mxu2 %v259_v13  ;;  %v227_v37 = vor.u32 %v277_v33, %v226_v32  ;;  %v218_v38 = vld [vmem:[#allocation2 + $0x10] sm:$0xf]  ;;  %v275_v39 = vld [vmem:[#allocation2 + $0x14] sm:$0xf0]  ;;  %v223_v40 = vor.u32 %v274_v35, %v220_v36  ;;  %v272_v41 = vld [vmem:[#allocation2 + $0x4] sm:$0xf] }
   0xf   :  { %v212_v42 = vld [vmem:[#allocation2 + $0x8] sm:$0xf0]  ;;  %v219_v43 = vor.u32 %v275_v39, %v218_v38  ;;  %v210_v44 = vld [vmem:[#allocation2] sm:$0xf]  ;;  %v273_v45 = vld [vmem:[#allocation2 + $0x4] sm:$0xf0] }
  0x10   :  { %157 = vmatpush.bf16.msra.mxu1 %v255_v16  ;;  %298 = vmatpush.bf16.msra.mxu3 %v255_v16  ;;  %v215_v46 = vor.u32 %v272_v41, %v212_v42  ;;  %v30_v47 = vld [vmem:[%s403_s0] sm:$0xff]  ;;  %v377_v48 = vld [vmem:[%s403_s0 + $0x8] sm:$0xff]  ;;  %v382_v49 = vld [vmem:[%s403_s0 + $0x10] sm:$0xff]  ;;  %v211_v50 = vor.u32 %v273_v45, %v210_v44 }
  0x11   :  { %v33_v51 = vpack.c.bf16 %v377_v48, %v30_v47  ;;  %v34_v52 = vpack.c.bf16 %v382_v49, %v382_v49  ;;  %v51_v53 = vld [vmem:[%s405_s2] sm:$0x3] }
  0x12   :  { %139 = vmatpush.bf16.msra.mxu0 %v251_v19  ;;  %290 = vmatpush.bf16.msra.mxu2 %v251_v19  ;;  %v54_v54 = vperm.slane %v51_v53, 1  ;;  %v53_v61 = vperm.slane %v51_v53, 0 }
  0x14   :  { %158 = vmatpush.bf16.msra.mxu1 %v247_v22  ;;  %299 = vmatpush.bf16.msra.mxu3 %v247_v22 }
  0x16   :  { %140 = vmatpush.bf16.msra.mxu0 %v243_v25  ;;  %291 = vmatpush.bf16.msra.mxu2 %v243_v25 }
  0x18   :  { %159 = vmatpush.bf16.msra.mxu1 %v239_v28  ;;  %300 = vmatpush.bf16.msra.mxu3 %v239_v28 }
  0x1a   :  { %141 = vmatpush.bf16.msra.mxu0 %v235_v31  ;;  %292 = vmatpush.bf16.msra.mxu2 %v235_v31 }
  0x1c   :  { %160 = vmatpush.bf16.msra.mxu1 %v231_v34  ;;  %301 = vmatpush.bf16.msra.mxu3 %v231_v34 }
  0x1e   :  { %142 = vmatpush.bf16.msra.mxu0 %v227_v37  ;;  %293 = vmatpush.bf16.msra.mxu2 %v227_v37 }
  0x20   :  { %161 = vmatpush.bf16.msra.mxu1 %v223_v40  ;;  %302 = vmatpush.bf16.msra.mxu3 %v223_v40 }
  0x22   :  { %143 = vmatpush.bf16.msra.mxu0 %v219_v43  ;;  %294 = vmatpush.bf16.msra.mxu2 %v219_v43 }
  0x24   :  { %162 = vmatpush.bf16.msra.mxu1 %v215_v46  ;;  %303 = vmatpush.bf16.msra.mxu3 %v215_v46 }
  0x26   :  { %144 = vmatpush.bf16.msra.mxu0 %v211_v50  ;;  %295 = vmatpush.bf16.msra.mxu2 %v211_v50 }
  0x27   :  { %163 = vmatmul.bf16.vlgmr.msra.gmra.mxu1 %v33_v51  ;;  %168 = vmatmul.bf16.vlgmr.msra.gmra.mxu3 %v34_v52 }
  0x29   :  { %145 = vmatmul.bf16.vlgmr.msra.gmra.mxu0 %v33_v51  ;;  %150 = vmatmul.bf16.vlgmr.msra.gmra.mxu2 %v34_v52 }
  0xa4   :  { %v164_v55 = vpop.f32.mrf.mxu1 }
  0xa5   :  { %v165_v56 = vadd.f32 %v164_v55, %v54_v54 }
  0xa6   :  { %v146_v63 = vpop.f32.mrf.mxu0 }
  0xa7   :  { %v176_v57 = vsub.f32 0.0, %v165_v56  ;;  %v147_v4 = vadd.f32 %v146_v63, %v53_v61 }
  0xa9   :  { %v179_v58 = vmul.f32 1.442695, %v176_v57  ;;  %v173_v10 = vmax.f32 %v147_v4, 0.0 }
  0xaa   :  { %v169_v59 = vpop.f32.mrf.mxu3 }
  0xab   :  { %307 = vpow2.f32 %v179_v58  ;;  %v170_v60 = vadd.f32 %v169_v59, %v54_v54  ;;  %v191_v15 = vsub.f32 %v173_v10, %v30_v47 }
  0xac   :  { %v151_v62 = vpop.f32.mrf.mxu2  ;;  %v166_v0 = vpop.f32.mrf.mxu1 }
  0xad   :  { %v178_v1 = vsub.f32 0.0, %v170_v60  ;;  %v167_v2 = vadd.f32 %v166_v0, %v54_v54  ;;  %v152_v12 = vadd.f32 %v151_v62, %v53_v61 }
  0xae   :  { %v148_v13 = vpop.f32.mrf.mxu0 }
  0xaf   :  { %v183_v3 = vmul.f32 1.442695, %v178_v1  ;;  %v177_v5 = vsub.f32 0.0, %v167_v2  ;;  %v149_v18 = vadd.f32 %v148_v13, %v53_v61  ;;  %v175_v19 = vmax.f32 %v152_v12, 0.0 }
  0xb1   :  { %v308_v6 = vpop.eup %307  ;;  %309 = vpow2.f32 %v183_v3  ;;  %v181_v7 = vmul.f32 1.442695, %v177_v5  ;;  %v174_v24 = vmax.f32 %v149_v18, 0.0  ;;  %v193_v25 = vsub.f32 %v175_v19, %v382_v49 }
  0xb2   :  { %v185_v8 = vadd.f32 1.0, %v308_v6  ;;  %v171_v9 = vpop.f32.mrf.mxu3 }
  0xb3   :  { %311 = vpow2.f32 %v181_v7  ;;  %v192_v27 = vsub.f32 %v174_v24, %v377_v48 }
  0xb4   :  { %v153_v11 = vpop.f32.mrf.mxu2  ;;  %313 = vrcp.f32 %v185_v8 }
  0xb7   :  { %v310_v14 = vpop.eup %309 }
  0xb8   :  { %v187_v16 = vadd.f32 1.0, %v310_v14 }
  0xb9   :  { %v312_v17 = vpop.eup %311 }
  0xba   :  { %v314_v20 = vpop.eup %313  ;;  %315 = vrcp.f32 %v187_v16  ;;  %v186_v21 = vadd.f32 1.0, %v312_v17 }
  0xbb   :  { %v194_v22 = vmul.f32 %v314_v20, %v191_v15 }
  0xbc   :  { %317 = vrcp.f32 %v186_v21 }
  0xbd   :  { %v197_v23 = vadd.f32 %v194_v22, %v30_v47 }
  0xbf   :  { %200 = vst [vmem:[%s406_s3] sm:$0xff] %v197_v23 }
  0xc0   :  { %v316_v26 = vpop.eup %315 }
  0xc1   :  { %v196_v28 = vmul.f32 %v316_v26, %v193_v25 }
  0xc2   :  { %v318_v29 = vpop.eup %317 }
  0xc3   :  { %v195_v30 = vmul.f32 %v318_v29, %v192_v27  ;;  %v199_v31 = vadd.f32 %v196_v28, %v382_v49 }
  0xc5   :  { %v198_v32 = vadd.f32 %v195_v30, %v377_v48  ;;  %202 = vst [vmem:[%s406_s3 + $0x10] sm:$0xff] %v199_v31 }
  0xc7   :  { %201 = vst [vmem:[%s406_s3 + $0x8] sm:$0xff] %v198_v32 }
  0xc8   :  { %207 = vsyncpa [#allocation3], 1 }

</bundles_post_ra>
